<compile_context>
chip_gen: v7x
topology: tpu7x:2x2x1
jax: 0.10.0
libtpu: 0.0.40
codegen_flags: <defaults>
</compile_context>

<pallas_src>
import functools

import jax
import jax.numpy as jnp
from jax import lax
from jax.experimental import pallas as pl
from jax.experimental.pallas import tpu as pltpu


def _attention2_kernel(dec_ref, enc_ref, w_ref, b_ref, ctx_ref, attn_ref,
                       encp_ref, *, se):
    # dec_ref : (bt, tsd, Dp)   decoder_hidden tile
    # enc_ref : (bt, Sep, Dp)   encoder_outputs tile (only consumed when j == 0)
    # w_ref   : (Dp, Dp)        Linear weight, PyTorch layout (out, in), zero-padded
    # b_ref   : (1, 1, Dp)      Linear bias, zero-padded
    # encp_ref: (bt, Sep, Dp)   VMEM scratch holding the projected encoder tile
    j = pl.program_id(1)
    cdt = encp_ref.dtype  # matmul operand dtype (native, or bf16 when requested)

    # Project the encoder tile once per batch tile; reuse for every Sd tile.
    @pl.when(j == 0)
    def _():
        # nn.Linear: enc @ W^T + b — contract enc's feature dim with W's `in`
        # dim directly (no transpose); f32 accumulation on the MXU.
        enc_p = lax.dot_general(
            enc_ref[...].astype(cdt), w_ref[...].astype(cdt),
            dimension_numbers=(((2,), (1,)), ((), ())),
            preferred_element_type=jnp.float32,
        )
        encp_ref[...] = (enc_p + b_ref[...].astype(jnp.float32)).astype(cdt)

    enc_p = encp_ref[...]                                            # (bt, Sep, Dp)

    # scores = dec @ enc_p^T — batched, contracting last dims (transpose-free).
    scores = lax.dot_general(
        dec_ref[...].astype(cdt), enc_p,
        dimension_numbers=(((2,), (2,)), ((0,), (0,))),
        preferred_element_type=jnp.float32,
    )                                                                # (bt, tsd, Sep)

    # Mask padded Se columns (zero-padded encoder rows still pick up the bias).
    if scores.shape[-1] != se:
        col = lax.broadcasted_iota(jnp.int32, scores.shape, 2)
        scores = jnp.where(col < se, scores, -1e30)

    # Numerically-stable softmax in f32.  Exact division (not approx reciprocal)
    # so attention rows sum to 1 and ctx matches the reference tightly.
    m = jnp.max(scores, axis=-1, keepdims=True)
    e = jnp.exp(scores - m)
    denom = jnp.sum(e, axis=-1, keepdims=True)
    attn = e / denom                                                 # f32

    # Cast once; reuse for the ctx matmul and (when dtypes match) the attn store.
    attn_mm = attn.astype(cdt)
    ctx = lax.dot_general(
        attn_mm, enc_p,
        dimension_numbers=(((2,), (1,)), ((0,), (0,))),
        preferred_element_type=jnp.float32,
    )                                                                # (bt, tsd, Dp)

    attn_ref[...] = attn_mm if attn_ref.dtype == cdt else attn.astype(attn_ref.dtype)
    ctx_ref[...] = ctx.astype(ctx_ref.dtype)


def _round_up(x, m):
    return ((x + m - 1) // m) * m


def attention2(decoder_hidden, encoder_outputs, weight, bias, *,
               max_block_b=8, matmul_dtype=None):
    """Pallas implementation of Attention2.forward.

    decoder_hidden : (B, Sd, D)
    encoder_outputs: (B, Se, D)
    weight         : (D, D)   PyTorch Linear weight (out, in)
    bias           : (D,)     Linear bias
    matmul_dtype   : optional dtype (e.g. jnp.bfloat16) for the matmul operands
                     on bf16-native MXUs; softmax stays in f32.
    Returns (context (B, Sd, D), attn (B, Sd, Se)).
    """
    B, Sd, D = decoder_hidden.shape
    Be, Se, De = encoder_outputs.shape
    assert Be == B and De == D, "shape mismatch between decoder/encoder inputs"

    in_dtype = decoder_hidden.dtype
    cdt = jnp.dtype(matmul_dtype) if matmul_dtype is not None else jnp.dtype(in_dtype)

    # Lane/sublane-aligned padded extents: D and Se to 128 (lanes), Sd to 8.
    Dp = _round_up(D, 128)
    Sep = _round_up(Se, 128)
    tsd = min(_round_up(Sd, 8), 256)          # Sd tile (sublane-aligned, capped)
    Sdp = _round_up(Sd, tsd)

    # Per-generation VMEM budget with headroom (v7x: 64 MiB phys; v5e/v6e: 128 MiB).
    try:
        vmem_cap = int(pltpu.get_tpu_info().vmem_capacity_bytes)
    except Exception:
        vmem_cap = 64 * 1024 * 1024           # assume the smallest (v7x) if unknown
    vmem_limit = (vmem_cap * 3) // 4

    itemsize = jnp.dtype(in_dtype).itemsize

    def step_bytes(bt):
        dec_t = bt * tsd * Dp * itemsize
        enc_t = bt * Sep * Dp * itemsize
        ctx_t = bt * tsd * Dp * itemsize
        attn_t = bt * tsd * Sep * itemsize
        encp_s = bt * Sep * Dp * jnp.dtype(cdt).itemsize
        f32_tmp = 3 * bt * tsd * Sep * 4      # scores / exp / attn f32 live values
        return 2 * (dec_t + enc_t + ctx_t + attn_t) + encp_s + f32_tmp

    # Batch tile from the VMEM budget (pad B to a multiple of bt; no divisor games).
    bt = max(1, min(B, max_block_b))
    while bt > 1 and step_bytes(bt) > vmem_limit // 2:
        bt //= 2
    Bp = _round_up(B, bt)

    # Zero-pad inputs to the aligned extents (padded rows/cols are masked/ignored).
    dec_pad = jnp.pad(decoder_hidden, ((0, Bp - B), (0, Sdp - Sd), (0, Dp - D)))
    enc_pad = jnp.pad(encoder_outputs, ((0, Bp - B), (0, Sep - Se), (0, Dp - D)))
    w_pad = jnp.pad(weight, ((0, Dp - D), (0, Dp - D)))
    b_pad = jnp.pad(bias, ((0, Dp - D),)).reshape(1, 1, Dp)

    grid = (Bp // bt, Sdp // tsd)

    # TODO(synk): pin the grid-invariant weight/bias specs to single-buffering
    # (pipeline_mode=pl.Buffered(1)) once confirmed stable in this JAX build.
    grid_spec = pltpu.PrefetchScalarGridSpec(
        num_scalar_prefetch=0,
        grid=grid,
        in_specs=[
            pl.BlockSpec((bt, tsd, Dp), lambda i, j: (i, j, 0)),
            pl.BlockSpec((bt, Sep, Dp), lambda i, j: (i, 0, 0)),
            pl.BlockSpec((Dp, Dp), lambda i, j: (0, 0)),
            pl.BlockSpec((1, 1, Dp), lambda i, j: (0, 0, 0)),
        ],
        out_specs=[
            pl.BlockSpec((bt, tsd, Dp), lambda i, j: (i, j, 0)),
            pl.BlockSpec((bt, tsd, Sep), lambda i, j: (i, j, 0)),
        ],
        scratch_shapes=[pltpu.VMEM((bt, Sep, Dp), cdt)],
    )

    ctx_pad, attn_pad = pl.pallas_call(
        functools.partial(_attention2_kernel, se=Se),
        out_shape=(
            jax.ShapeDtypeStruct((Bp, Sdp, Dp), in_dtype),
            jax.ShapeDtypeStruct((Bp, Sdp, Sep), in_dtype),
        ),
        grid_spec=grid_spec,
        compiler_params=pltpu.CompilerParams(
            dimension_semantics=("parallel", "arbitrary"),
            vmem_limit_bytes=vmem_limit,
        ),
    )(dec_pad, enc_pad, w_pad, b_pad)

    return ctx_pad[:B, :Sd, :D], attn_pad[:B, :Sd, :Se]


def _reference(decoder_hidden, encoder_outputs, weight, bias):
    enc_p = jnp.einsum("bsd,od->bso", encoder_outputs, weight,
                       precision="highest") + bias
    scores = jnp.einsum("bqd,bkd->bqk", decoder_hidden, enc_p, precision="highest")
    attn = jax.nn.softmax(scores, axis=-1)
    ctx = jnp.einsum("bqk,bkd->bqd", attn, enc_p, precision="highest")
    return ctx, attn


if __name__ == "__main__":
    B, Sd, Se, D = 2, 8, 8, 32

    key = jax.random.PRNGKey(0)
    k_dec, k_enc, k_w, k_b = jax.random.split(key, 4)

    decoder_hidden = jax.random.normal(k_dec, (B, Sd, D), dtype=jnp.float32)
    encoder_outputs = jax.random.normal(k_enc, (B, Se, D), dtype=jnp.float32)
    bound = 1.0 / (D ** 0.5)
    weight = jax.random.uniform(k_w, (D, D), jnp.float32, -bound, bound)
    bias = jax.random.uniform(k_b, (D,), jnp.float32, -bound, bound)

    ctx, attn = attention2(decoder_hidden, encoder_outputs, weight, bias)
    ctx, attn = jax.block_until_ready((ctx, attn))

    ctx_ref, attn_ref = _reference(decoder_hidden, encoder_outputs, weight, bias)
    assert jnp.allclose(ctx, ctx_ref, atol=2e-3, rtol=2e-3), (
        float(jnp.max(jnp.abs(ctx - ctx_ref))))
    assert jnp.allclose(attn, attn_ref, atol=2e-3, rtol=2e-3), (
        float(jnp.max(jnp.abs(attn - attn_ref))))
    # Softmax rows must sum to 1 (exact division, no approx reciprocal).
    assert jnp.allclose(jnp.sum(attn, axis=-1), 1.0, atol=1e-5)

    print("KERNEL_OK")
</pallas_src>

<mosaic_0001>
module attributes {stable_mosaic.version = 11 : i64} {
  func.func @_attention2_kernel(%arg0: i32, %arg1: i32, %arg2: memref<2x8x128xf32, #tpu.memory_space<vmem>>, %arg3: memref<2x128x128xf32, #tpu.memory_space<vmem>>, %arg4: memref<128x128xf32, #tpu.memory_space<vmem>>, %arg5: memref<1x1x128xf32, #tpu.memory_space<vmem>>, %arg6: memref<2x8x128xf32, #tpu.memory_space<vmem>>, %arg7: memref<2x8x128xf32, #tpu.memory_space<vmem>>, %arg8: memref<2x128x128xf32, #tpu.memory_space<vmem>>) attributes {dimension_semantics = [#tpu.dimension_semantics<parallel>, #tpu.dimension_semantics<arbitrary>], iteration_bounds = array<i64: 1, 1>, scalar_prefetch = 0 : i64, scratch_operands = 1 : i64, tpu.core_type = #tpu.core_type<tc>, window_params = [{transform_indices = @transform_0, window_bounds = array<i64: 2, 8, 128>}, {transform_indices = @transform_1, window_bounds = array<i64: 2, 128, 128>}, {pipeline_mode = #tpu.pipeline_mode<synchronous>, transform_indices = @transform_2, window_bounds = array<i64: 128, 128>}, {pipeline_mode = #tpu.pipeline_mode<synchronous>, transform_indices = @transform_3, window_bounds = array<i64: 1, 1, 128>}, {transform_indices = @transform_4, window_bounds = array<i64: 2, 8, 128>}, {transform_indices = @transform_5, window_bounds = array<i64: 2, 8, 128>}]} {
    %c0_i32 = arith.constant 0 : i32
    %0 = arith.cmpi eq, %arg1, %c0_i32 : i32
    %1 = arith.extui %0 : i1 to i32
    %c0_i32_0 = arith.constant 0 : i32
    %2 = arith.cmpi ne, %1, %c0_i32_0 : i32
    scf.if %2 {
      %c0_16 = arith.constant 0 : index
      %c0_17 = arith.constant 0 : index
      %c0_18 = arith.constant 0 : index
      %23 = vector.load %arg3[%c0_16, %c0_17, %c0_18] : memref<2x128x128xf32, #tpu.memory_space<vmem>>, vector<2x128x128xf32>
      %c0_19 = arith.constant 0 : index
      %c0_20 = arith.constant 0 : index
      %24 = vector.load %arg4[%c0_19, %c0_20] : memref<128x128xf32, #tpu.memory_space<vmem>>, vector<128x128xf32>
      %cst_21 = arith.constant dense<0.000000e+00> : vector<2x128x128xf32>
      %25 = tpu.matmul %23, %24, %cst_21 {dimension_numbers = #tpu.dot_dimension_numbers<[2], [1], [0, 1], [0], [0, 0, 0, 1, 1, 0], [], []>} : vector<2x128x128xf32>, vector<128x128xf32>, vector<2x128x128xf32> -> vector<2x128x128xf32>
      %c0_22 = arith.constant 0 : index
      %c0_23 = arith.constant 0 : index
      %c0_24 = arith.constant 0 : index
      %26 = vector.load %arg5[%c0_22, %c0_23, %c0_24] : memref<1x1x128xf32, #tpu.memory_space<vmem>>, vector<1x1x128xf32>
      %27 = vector.broadcast %26 : vector<1x1x128xf32> to vector<2x128x128xf32>
      %28 = arith.addf %25, %27 : vector<2x128x128xf32>
      %c0_25 = arith.constant 0 : index
      %c0_26 = arith.constant 0 : index
      %c0_27 = arith.constant 0 : index
      %29 = vector.load %arg8[%c0_25, %c0_26, %c0_27] : memref<2x128x128xf32, #tpu.memory_space<vmem>>, vector<2x128x128xf32>
      tpu.vector_store %arg8[%c0_25, %c0_26, %c0_27], %28 {strides = array<i32>} : memref<2x128x128xf32, #tpu.memory_space<vmem>>, vector<2x128x128xf32>,
    } else {
    }
    %c0 = arith.constant 0 : index
    %c0_1 = arith.constant 0 : index
    %c0_2 = arith.constant 0 : index
    %3 = vector.load %arg8[%c0, %c0_1, %c0_2] : memref<2x128x128xf32, #tpu.memory_space<vmem>>, vector<2x128x128xf32>
    %c0_3 = arith.constant 0 : index
    %c0_4 = arith.constant 0 : index
    %c0_5 = arith.constant 0 : index
    %4 = vector.load %arg2[%c0_3, %c0_4, %c0_5] : memref<2x8x128xf32, #tpu.memory_space<vmem>>, vector<2x8x128xf32>
    %cst = arith.constant dense<0.000000e+00> : vector<2x8x128xf32>
    %5 = tpu.matmul %4, %3, %cst {dimension_numbers = #tpu.dot_dimension_numbers<[2], [2], [1], [1], [0, 0, 0, 1, 1, 1], [0], [0]>} : vector<2x8x128xf32>, vector<2x128x128xf32>, vector<2x8x128xf32> -> vector<2x8x128xf32>
    %6 = tpu.iota {dimensions = array<i32: 2>} : vector<2x8x128xi32>
    %c8_i32 = arith.constant 8 : i32
    %7 = vector.broadcast %c8_i32 : i32 to vector<2x8x128xi32>
    %8 = arith.cmpi slt, %6, %7 : vector<2x8x128xi32>
    %cst_6 = arith.constant -1.000000e+30 : f32
    %9 = vector.broadcast %cst_6 : f32 to vector<2x8x128xf32>
    %10 = arith.select %8, %5, %9 : vector<2x8x128xi1>, vector<2x8x128xf32>
    %cst_7 = arith.constant dense<0xFF800000> : vector<2x8xf32>
    %11 = vector.multi_reduction <maximumf>, %10, %cst_7 [2] : vector<2x8x128xf32> to vector<2x8xf32>
    %12 = vector.shape_cast %11 : vector<2x8xf32> to vector<2x8x1xf32>
    %13 = vector.broadcast %12 : vector<2x8x1xf32> to vector<2x8x128xf32>
    %14 = arith.subf %10, %13 : vector<2x8x128xf32>
    %15 = math.exp %14 : vector<2x8x128xf32>
    %cst_8 = arith.constant dense<0.000000e+00> : vector<2x8xf32>
    %16 = vector.multi_reduction <add>, %15, %cst_8 [2] : vector<2x8x128xf32> to vector<2x8xf32>
    %17 = vector.shape_cast %16 : vector<2x8xf32> to vector<2x8x1xf32>
    %18 = vector.broadcast %17 : vector<2x8x1xf32> to vector<2x8x128xf32>
    %19 = arith.divf %15, %18 : vector<2x8x128xf32>
    %cst_9 = arith.constant dense<0.000000e+00> : vector<2x8x128xf32>
    %20 = tpu.matmul %19, %3, %cst_9 {dimension_numbers = #tpu.dot_dimension_numbers<[2], [1], [1], [2], [0, 0, 0, 1, 1, 2], [0], [0]>} : vector<2x8x128xf32>, vector<2x128x128xf32>, vector<2x8x128xf32> -> vector<2x8x128xf32>
    %c0_10 = arith.constant 0 : index
    %c0_11 = arith.constant 0 : index
    %c0_12 = arith.constant 0 : index
    %21 = vector.load %arg7[%c0_10, %c0_11, %c0_12] : memref<2x8x128xf32, #tpu.memory_space<vmem>>, vector<2x8x128xf32>
    tpu.vector_store %arg7[%c0_10, %c0_11, %c0_12], %19 {strides = array<i32>} : memref<2x8x128xf32, #tpu.memory_space<vmem>>, vector<2x8x128xf32>,
    %c0_13 = arith.constant 0 : index
    %c0_14 = arith.constant 0 : index
    %c0_15 = arith.constant 0 : index
    %22 = vector.load %arg6[%c0_13, %c0_14, %c0_15] : memref<2x8x128xf32, #tpu.memory_space<vmem>>, vector<2x8x128xf32>
    tpu.vector_store %arg6[%c0_13, %c0_14, %c0_15], %20 {strides = array<i32>} : memref<2x8x128xf32, #tpu.memory_space<vmem>>, vector<2x8x128xf32>,
    return
  }
  func.func @transform_0(%arg0: i32, %arg1: i32) -> (i32, i32, i32) {
    %c0_i32 = arith.constant 0 : i32
    %c0_i32_0 = arith.constant 0 : i32
    return %arg0, %arg1, %c0_i32 : i32, i32, i32
  }
  func.func @transform_1(%arg0: i32, %arg1: i32) -> (i32, i32, i32) {
    %c0_i32 = arith.constant 0 : i32
    %c0_i32_0 = arith.constant 0 : i32
    %c0_i32_1 = arith.constant 0 : i32
    return %arg0, %c0_i32, %c0_i32_0 : i32, i32, i32
  }
  func.func @transform_2(%arg0: i32, %arg1: i32) -> (i32, i32) {
    %c0_i32 = arith.constant 0 : i32
    %c0_i32_0 = arith.constant 0 : i32
    %c0_i32_1 = arith.constant 0 : i32
    return %c0_i32, %c0_i32_0 : i32, i32
  }
  func.func @transform_3(%arg0: i32, %arg1: i32) -> (i32, i32, i32) {
    %c0_i32 = arith.constant 0 : i32
    %c0_i32_0 = arith.constant 0 : i32
    %c0_i32_1 = arith.constant 0 : i32
    %c0_i32_2 = arith.constant 0 : i32
    return %c0_i32, %c0_i32_0, %c0_i32_1 : i32, i32, i32
  }
  func.func @transform_4(%arg0: i32, %arg1: i32) -> (i32, i32, i32) {
    %c0_i32 = arith.constant 0 : i32
    %c0_i32_0 = arith.constant 0 : i32
    return %arg0, %arg1, %c0_i32 : i32, i32, i32
  }
  func.func @transform_5(%arg0: i32, %arg1: i32) -> (i32, i32, i32) {
    %c0_i32 = arith.constant 0 : i32
    %c0_i32_0 = arith.constant 0 : i32
    return %arg0, %arg1, %c0_i32 : i32, i32, i32
  }
}

</mosaic_0001>

<bundles_post_ra>
// kernel: tpu_custom_call.1
= control target key start
LH: loop header
LB: loop body
LE: loop exit
PB: predicated region body
PF: predicated region fallthrough
CT: control target
= control target key end

     0   :  { %11 = vsyncpa [#allocation4], 0  ;;  %s1617_s0 = inlined_call_operand.hbm [shape: f32[2,8,128], index: 0, kind: input, shape index: {}]   ;;  %s1618_s1 = inlined_call_operand.hbm [shape: f32[2,128,128], index: 1, kind: input, shape index: {}]   ;;  %s1619_s2 = inlined_call_operand.hbm [shape: f32[128,128], index: 2, kind: input, shape index: {}]   ;;  %s1620_s3 = inlined_call_operand.vmem [shape: f32[1,1,128], index: 3, kind: input, shape index: {}]   ;;  %s1621_s4 = inlined_call_operand.hbm [shape: f32[2,8,128], index: 4, kind: output, shape index: {0}]   ;;  %s1622_s5 = inlined_call_operand.hbm [shape: f32[2,8,128], index: 5, kind: output, shape index: {1}]  }
   0x1   :  { %12 = vsyncpa [#allocation7], 0 }
   0x2   :  { %13 = vsyncpa [#allocation5], 0 }
   0x3   :  { %14 = vsyncpa [#allocation11], 0  ;;  %s1354_s18 = smov [#allocation6]   ;;  %s1355_s20 = smov [#allocation3]  }
   0x4   :  { %s32_s19 = sshll.u32 %s1354_s18, 4  ;;  %s20_s21 = sshll.u32 %s1355_s20, 4  ;;  %s33_s19 = int_to_ptr.vmem [resolvable:$true] %s32_s19  ;;  %s1394_s21 = int_to_ptr.vmem [resolvable:$true] %s20_s21 }
   0x5   :  { %s1236_s24 = scalar_lea.hbm %s1618_s1, 4096 }
   0x6   :  { %p1237_p0 = scmp.ne.s32.totalorder %s1618_s1, %s1236_s24  ;;  %p1240_p1 = scmp.lt.u32.totalorder %s1236_s24, %s1618_s1 }
   0x8   :  { %p1242_p2 = pnand %p1240_p1, %p1237_p0 }
   0xa   :  { %1245 = shalt.err (!%p1242_p2)
}
   0xb   :  { %s1246_s29 = scalar_lea.vmem %s33_s19, 4096  ;;  %p1251_p4 = scmp.lt.s32.totalorder %s33_s19, %s33_s19 }
   0xc   :  { %p1247_p3 = scmp.ne.s32.totalorder %s33_s19, %s1246_s29  ;;  %p1252_p5 = scmp.lt.s32.totalorder %s1246_s29, %s1246_s29 }
   0xe   :  { %p1253_p6 = por %p1252_p5, %p1251_p4 }
  0x10   :  { %p1254_p7 = pnand %p1253_p6, %p1247_p3 }
  0x12   :  { %1257 = shalt.err (!%p1254_p7)
}
  0x13   :  { %s1356_s30 = smov 128   ;;  %s1357_s6 = smov 8  }
  0x14   :  { %38 = dma.hbm_to_vmem [thread:$0]  %s1618_s1, 4096, %s33_s19, [#allocation7], %s1356_s30, %s1356_s30, %s1357_s6  }
  0x15   :  { %s1258_s11 = scalar_lea.hbm %s1617_s0, 256 }
  0x16   :  { %p1259_p8 = scmp.ne.s32.totalorder %s1617_s0, %s1258_s11  ;;  %p1262_p9 = scmp.lt.u32.totalorder %s1258_s11, %s1617_s0 }
  0x18   :  { %p1264_p10 = pnand %p1262_p9, %p1259_p8 }
  0x1a   :  { %1267 = shalt.err (!%p1264_p10)
}
  0x1b   :  { %s1268_s16 = scalar_lea.vmem %s1394_s21, 256  ;;  %p1273_p12 = scmp.lt.s32.totalorder %s1394_s21, %s1394_s21 }
  0x1c   :  { %p1269_p11 = scmp.ne.s32.totalorder %s1394_s21, %s1268_s16  ;;  %p1274_p13 = scmp.lt.s32.totalorder %s1268_s16, %s1268_s16 }
  0x1e   :  { %p1275_p0 = por %p1274_p13, %p1273_p12 }
  0x20   :  { %p1276_p1 = pnand %p1275_p0, %p1269_p11 }
  0x22   :  { %1279 = shalt.err (!%p1276_p1)
}
  0x23   :  { %26 = dma.hbm_to_vmem [thread:$0]  %s1617_s0, 256, %s1394_s21, [#allocation4], %s1356_s30, %s1356_s30, %s1357_s6  }
  0x24   :  { %s1358_s18 = smov [#allocation8]   ;;  %s1280_s23 = scalar_lea.hbm %s1619_s2, 2048 }
  0x25   :  { %s44_s19 = sshll.u32 %s1358_s18, 4  ;;  %p1281_p2 = scmp.ne.s32.totalorder %s1619_s2, %s1280_s23  ;;  %s45_s19 = int_to_ptr.vmem [resolvable:$true] %s44_s19 }
  0x26   :  { %p1284_p3 = scmp.lt.u32.totalorder %s1280_s23, %s1619_s2 }
  0x28   :  { %p1286_p4 = pnand %p1284_p3, %p1281_p2 }
  0x2a   :  { %1289 = shalt.err (!%p1286_p4)
}
  0x2b   :  { %s1290_s28 = scalar_lea.vmem %s45_s19, 2048  ;;  %p1295_p6 = scmp.lt.s32.totalorder %s45_s19, %s45_s19 }
  0x2c   :  { %p1291_p5 = scmp.ne.s32.totalorder %s45_s19, %s1290_s28  ;;  %p1296_p7 = scmp.lt.s32.totalorder %s1290_s28, %s1290_s28 }
  0x2e   :  { %p1297_p8 = por %p1296_p7, %p1295_p6 }
  0x30   :  { %p1298_p9 = pnand %p1297_p8, %p1291_p5 }
  0x32   :  { %1301 = shalt.err (!%p1298_p9)
}
  0x33   :  { %50 = dma.hbm_to_vmem [thread:$0]  %s1619_s2, 2048, %s45_s19, [#allocation7], %s1356_s30, %s1356_s30, %s1357_s6  }
  0x34   :  { %1346 = dma.done.wait [#allocation4], 256  }
  0x35   :  { %1347 = vsyncadd [#allocation4], 4294967040 }
  0x36   :  { %1348 = dma.done.wait [#allocation7], 6144  }
  0x37   :  { %1349 = vsyncadd [#allocation7], 4294961152  ;;  %v98_v0 = vld [vmem:[#allocation8] sm:$0xff]  ;;  %v99_v1 = vld [vmem:[#allocation8 + $0x8] sm:$0xff]  ;;  %v1359_v56 = vmov 0.0|0.0   ;;  %vm1360_vm0 = vmmov 0  }
  0x38   :  { %v100_v2 = vld [vmem:[#allocation8 + $0x10] sm:$0xff]  ;;  %v1090_v3 = vpack.c.bf16 %v99_v1, %v98_v0  ;;  %v101_v4 = vld [vmem:[#allocation8 + $0x18] sm:$0xff]  ;;  %v66_v6 = vld [vmem:[#allocation6] sm:$0xff]  ;;  %1122 = vmatprep.subr.bf16.mxu1 %v1359_v56  ;;  %v1361_v57 = vmov 0.0  }
  0x39   :  { %v1094_v5 = vpack.c.bf16 %v101_v4, %v100_v2  ;;  %v102_v7 = vld [vmem:[#allocation8 + $0x20] sm:$0xff]  ;;  %v103_v8 = vld [vmem:[#allocation8 + $0x28] sm:$0xff]  ;;  %902 = vmatprep.mubr.f32.mxu0 %v66_v6  ;;  %v104_v10 = vld [vmem:[#allocation8 + $0x30] sm:$0xff]  ;;  %982 = vmatprep.mubr.msk.f32.mxu1 %vm1360_vm0, %v1361_v57 }
  0x3a   :  { %1091 = vmatprep.subr.bf16.mxu0 %v1090_v3  ;;  %v1098_v9 = vpack.c.bf16 %v103_v8, %v102_v7  ;;  %v105_v11 = vld [vmem:[#allocation8 + $0x38] sm:$0xff]  ;;  %v106_v13 = vld [vmem:[#allocation8 + $0x40] sm:$0xff]  ;;  %v107_v14 = vld [vmem:[#allocation8 + $0x48] sm:$0xff] }
  0x3b   :  { %1093 = vmatpush3.bf16.xpose.msra.mxu0 %v1090_v3  ;;  %v1102_v12 = vpack.c.bf16 %v105_v11, %v104_v10  ;;  %v1106_v15 = vpack.c.bf16 %v107_v14, %v106_v13  ;;  %v108_v16 = vld [vmem:[#allocation8 + $0x50] sm:$0xff]  ;;  %v109_v17 = vld [vmem:[#allocation8 + $0x58] sm:$0xff]  ;;  %v110_v19 = vld [vmem:[#allocation8 + $0x60] sm:$0xff] }
  0x3c   :  { %1095 = vmatprep.subr.bf16.mxu0 %v1094_v5  ;;  %v1110_v18 = vpack.c.bf16 %v109_v17, %v108_v16  ;;  %v111_v20 = vld [vmem:[#allocation8 + $0x68] sm:$0xff]  ;;  %v112_v22 = vld [vmem:[#allocation8 + $0x70] sm:$0xff]  ;;  %v113_v23 = vld [vmem:[#allocation8 + $0x78] sm:$0xff] }
  0x3d   :  { %v1114_v21 = vpack.c.bf16 %v111_v20, %v110_v19  ;;  %v1118_v24 = vpack.c.bf16 %v113_v23, %v112_v22  ;;  %v67_v25 = vld [vmem:[#allocation6 + $0x8] sm:$0xff]  ;;  %v68_v26 = vld [vmem:[#allocation6 + $0x10] sm:$0xff]  ;;  %v69_v27 = vld [vmem:[#allocation6 + $0x18] sm:$0xff] }
  0x3e   :  { %v70_v28 = vld [vmem:[#allocation6 + $0x20] sm:$0xff]  ;;  %v71_v29 = vld [vmem:[#allocation6 + $0x28] sm:$0xff]  ;;  %v72_v30 = vld [vmem:[#allocation6 + $0x30] sm:$0xff] }
  0x3f   :  { %v73_v31 = vld [vmem:[#allocation6 + $0x38] sm:$0xff]  ;;  %v74_v32 = vld [vmem:[#allocation6 + $0x40] sm:$0xff]  ;;  %v75_v33 = vld [vmem:[#allocation6 + $0x48] sm:$0xff] }
  0x40   :  { %v76_v34 = vld [vmem:[#allocation6 + $0x50] sm:$0xff]  ;;  %v77_v35 = vld [vmem:[#allocation6 + $0x58] sm:$0xff]  ;;  %v78_v36 = vld [vmem:[#allocation6 + $0x60] sm:$0xff] }
  0x41   :  { %v79_v37 = vld [vmem:[#allocation6 + $0x68] sm:$0xff]  ;;  %v80_v38 = vld [vmem:[#allocation6 + $0x70] sm:$0xff]  ;;  %v81_v39 = vld [vmem:[#allocation6 + $0x78] sm:$0xff] }
  0x42   :  { %v82_v40 = vld [vmem:[#allocation6 + $0x80] sm:$0xff]  ;;  %v83_v41 = vld [vmem:[#allocation6 + $0x88] sm:$0xff]  ;;  %v84_v42 = vld [vmem:[#allocation6 + $0x90] sm:$0xff] }
  0x43   :  { %1097 = vmatpush3.bf16.xpose.msra.mxu0 %v1094_v5  ;;  %v85_v43 = vld [vmem:[#allocation6 + $0x98] sm:$0xff]  ;;  %v86_v44 = vld [vmem:[#allocation6 + $0xa0] sm:$0xff]  ;;  %v87_v45 = vld [vmem:[#allocation6 + $0xa8] sm:$0xff] }
  0x44   :  { %1099 = vmatprep.subr.bf16.mxu0 %v1098_v9  ;;  %v88_v46 = vld [vmem:[#allocation6 + $0xb0] sm:$0xff]  ;;  %v89_v47 = vld [vmem:[#allocation6 + $0xb8] sm:$0xff]  ;;  %v90_v48 = vld [vmem:[#allocation6 + $0xc0] sm:$0xff] }
  0x45   :  { %v91_v49 = vld [vmem:[#allocation6 + $0xc8] sm:$0xff]  ;;  %v92_v50 = vld [vmem:[#allocation6 + $0xd0] sm:$0xff]  ;;  %v93_v51 = vld [vmem:[#allocation6 + $0xd8] sm:$0xff] }
  0x46   :  { %v94_v52 = vld [vmem:[#allocation6 + $0xe0] sm:$0xff]  ;;  %v95_v53 = vld [vmem:[#allocation6 + $0xe8] sm:$0xff]  ;;  %v96_v54 = vld [vmem:[#allocation6 + $0xf0] sm:$0xff] }
  0x47   :  { %v97_v55 = vld [vmem:[#allocation6 + $0xf8] sm:$0xff]  ;;  %v1455_v58 = vld [vmem:[%s1620_s3] ss:$0 sm:$0xff]  ;;  %s1362_s3 = smov [#allocation10]  }
  0x48   :  { %s736_s7 = sshll.u32 %s1362_s3, 4  ;;  %s737_s7 = int_to_ptr.vmem [resolvable:$true] %s736_s7 }
  0x49   :  { %s1302_s8 = scalar_lea.vmem %s737_s7, 256  ;;  %p1307_p11 = scmp.lt.s32.totalorder %s737_s7, %s737_s7 }
  0x4a   :  { %p1303_p10 = scmp.ne.s32.totalorder %s737_s7, %s1302_s8  ;;  %p1308_p12 = scmp.lt.s32.totalorder %s1302_s8, %s1302_s8 }
  0x4b   :  { %1101 = vmatpush3.bf16.xpose.msra.mxu0 %v1098_v9 }
  0x4c   :  { %1103 = vmatprep.subr.bf16.mxu0 %v1102_v12  ;;  %p1309_p13 = por %p1308_p12, %p1307_p11 }
  0x4e   :  { %p1310_p0 = pnand %p1309_p13, %p1303_p10 }
  0x53   :  { %1105 = vmatpush3.bf16.xpose.msra.mxu0 %v1102_v12 }
  0x54   :  { %1107 = vmatprep.subr.bf16.mxu0 %v1106_v15 }
  0x5b   :  { %1109 = vmatpush3.bf16.xpose.msra.mxu0 %v1106_v15 }
  0x5c   :  { %1111 = vmatprep.subr.bf16.mxu0 %v1110_v18 }
  0x63   :  { %1113 = vmatpush3.bf16.xpose.msra.mxu0 %v1110_v18 }
  0x64   :  { %1115 = vmatprep.subr.bf16.mxu0 %v1114_v21 }
  0x6b   :  { %1117 = vmatpush3.bf16.xpose.msra.mxu0 %v1114_v21 }
  0x6c   :  { %1119 = vmatprep.subr.bf16.mxu0 %v1118_v24 }
  0x73   :  { %1121 = vmatpush3.bf16.xpose.msra.mxu0 %v1118_v24 }
  0x74   :  { %1146 = vmatprep.subr.bf16.mxu0 %v1359_v56 }
  0x7a   :  { %903 = vmatmul.mubr.f32.vlgmr.msra.gmra.mrb[0].mxu0 %v67_v25 }
  0x7b   :  { %905 = vmatprep.mubr.f32.mxu0 %v68_v26 }
  0x7e   :  { %906 = vmatmul.mubr.f32.gmra.mrb[2].mxu0 %v69_v27 }
  0x7f   :  { %908 = vmatprep.mubr.f32.mxu0 %v70_v28 }
  0x82   :  { %909 = vmatmul.mubr.f32.gmra.mrb[4].mxu0 %v71_v29 }
  0x83   :  { %911 = vmatprep.mubr.f32.mxu0 %v72_v30 }
  0x86   :  { %912 = vmatmul.mubr.f32.gmra.mrb[6].mxu0 %v73_v31 }
  0x87   :  { %914 = vmatprep.mubr.f32.mxu0 %v74_v32 }
  0x8a   :  { %915 = vmatmul.mubr.f32.gmra.mrb[8].mxu0 %v75_v33 }
  0x8b   :  { %917 = vmatprep.mubr.f32.mxu0 %v76_v34 }
  0x8e   :  { %918 = vmatmul.mubr.f32.gmra.mrb[10].mxu0 %v77_v35 }
  0x8f   :  { %920 = vmatprep.mubr.f32.mxu0 %v78_v36 }
  0x92   :  { %921 = vmatmul.mubr.f32.gmra.mrb[12].mxu0 %v79_v37 }
  0x93   :  { %923 = vmatprep.mubr.f32.mxu0 %v80_v38 }
  0x96   :  { %924 = vmatmul.mubr.f32.gmra.mrb[14].mxu0 %v81_v39 }
  0x97   :  { %926 = vmatprep.mubr.f32.mxu0 %v82_v40 }
  0x9a   :  { %927 = vmatmul.mubr.f32.gmra.mrb[16].mxu0 %v83_v41 }
  0x9b   :  { %929 = vmatprep.mubr.f32.mxu0 %v84_v42 }
  0x9e   :  { %930 = vmatmul.mubr.f32.gmra.mrb[18].mxu0 %v85_v43 }
  0x9f   :  { %932 = vmatprep.mubr.f32.mxu0 %v86_v44 }
  0xa2   :  { %933 = vmatmul.mubr.f32.gmra.mrb[20].mxu0 %v87_v45 }
  0xa3   :  { %935 = vmatprep.mubr.f32.mxu0 %v88_v46 }
  0xa6   :  { %936 = vmatmul.mubr.f32.gmra.mrb[22].mxu0 %v89_v47 }
  0xa7   :  { %938 = vmatprep.mubr.f32.mxu0 %v90_v48 }
  0xaa   :  { %939 = vmatmul.mubr.f32.gmra.mrb[24].mxu0 %v91_v49 }
  0xab   :  { %941 = vmatprep.mubr.f32.mxu0 %v92_v50 }
  0xae   :  { %942 = vmatmul.mubr.f32.gmra.mrb[26].mxu0 %v93_v51 }
  0xaf   :  { %944 = vmatprep.mubr.f32.mxu0 %v94_v52 }
  0xb2   :  { %945 = vmatmul.mubr.f32.gmra.mrb[28].mxu0 %v95_v53 }
  0xb3   :  { %947 = vmatprep.mubr.f32.mxu0 %v96_v54 }
  0xb6   :  { %948 = vmatmul.mubr.f32.gmra.mrb[30].mxu0 %v97_v55 }
  0xb7   :  { %1017 = vmatprep.mubr.msk.f32.mxu0 %vm1360_vm0, %v1361_v57 }
 0x14d   :  { %v904_v59 = vpop.f32.mrb[0].mxu0 }
 0x14e   :  { %v193_v60 = vadd.f32 %v904_v59, %v1455_v58  ;;  %v187_v61 = vpop.f32.mrb[1].mxu0 }
 0x14f   :  { %v188_v62 = vadd.f32 %v1455_v58, %v187_v61 }
 0x151   :  { %v907_v63 = vpop.f32.mrb[2].mxu0  ;;  %v1459_v0 = vpack.c.bf16 %v193_v60, %v188_v62 }
 0x152   :  { %v203_v1 = vadd.f32 %v907_v63, %v1455_v58  ;;  %v197_v2 = vpop.f32.mrb[3].mxu0 }
 0x153   :  { %v198_v3 = vadd.f32 %v1455_v58, %v197_v2  ;;  %1124 = vmatpush3.bf16.xpose.msra.mxu1 %v1459_v0 }
 0x154   :  { %1125 = vmatprep.subr.bf16.mxu1 %v1359_v56 }
 0x155   :  { %v1465_v4 = vpack.c.bf16 %v203_v1, %v198_v3  ;;  %v910_v5 = vpop.f32.mrb[4].mxu0 }
 0x156   :  { %v213_v6 = vadd.f32 %v910_v5, %v1455_v58  ;;  %v207_v7 = vpop.f32.mrb[5].mxu0 }
 0x157   :  { %v208_v8 = vadd.f32 %v1455_v58, %v207_v7 }
 0x159   :  { %v1469_v9 = vpack.c.bf16 %v213_v6, %v208_v8  ;;  %v913_v10 = vpop.f32.mrb[6].mxu0 }
 0x15a   :  { %v223_v11 = vadd.f32 %v913_v10, %v1455_v58  ;;  %v217_v12 = vpop.f32.mrb[7].mxu0 }
 0x15b   :  { %v218_v13 = vadd.f32 %v1455_v58, %v217_v12  ;;  %1127 = vmatpush3.bf16.xpose.msra.mxu1 %v1465_v4 }
 0x15c   :  { %1128 = vmatprep.subr.bf16.mxu1 %v1359_v56 }
 0x15d   :  { %v1475_v14 = vpack.c.bf16 %v223_v11, %v218_v13  ;;  %v916_v15 = vpop.f32.mrb[8].mxu0 }
 0x15e   :  { %v233_v16 = vadd.f32 %v916_v15, %v1455_v58  ;;  %v227_v17 = vpop.f32.mrb[9].mxu0 }
 0x15f   :  { %v228_v18 = vadd.f32 %v1455_v58, %v227_v17 }
 0x161   :  { %v1479_v19 = vpack.c.bf16 %v233_v16, %v228_v18  ;;  %v919_v20 = vpop.f32.mrb[10].mxu0  ;;  %v410_v18 = vld [vmem:[#allocation3] sm:$0xff] }
 0x162   :  { %v243_v21 = vadd.f32 %v919_v20, %v1455_v58  ;;  %v237_v22 = vpop.f32.mrb[11].mxu0 }
 0x163   :  { %v238_v23 = vadd.f32 %v1455_v58, %v237_v22  ;;  %1130 = vmatpush3.bf16.xpose.msra.mxu1 %v1469_v9 }
 0x164   :  { %1131 = vmatprep.subr.bf16.mxu1 %v1359_v56 }
 0x165   :  { %v1485_v24 = vpack.c.bf16 %v243_v21, %v238_v23  ;;  %v922_v25 = vpop.f32.mrb[12].mxu0 }
 0x166   :  { %v253_v26 = vadd.f32 %v922_v25, %v1455_v58  ;;  %v247_v27 = vpop.f32.mrb[13].mxu0 }
 0x167   :  { %v248_v28 = vadd.f32 %v1455_v58, %v247_v27 }
 0x169   :  { %v1489_v29 = vpack.c.bf16 %v253_v26, %v248_v28  ;;  %v925_v30 = vpop.f32.mrb[14].mxu0 }
 0x16a   :  { %v263_v31 = vadd.f32 %v925_v30, %v1455_v58  ;;  %v257_v32 = vpop.f32.mrb[15].mxu0 }
 0x16b   :  { %v258_v33 = vadd.f32 %v1455_v58, %v257_v32  ;;  %1133 = vmatpush3.bf16.xpose.msra.mxu1 %v1475_v14 }
 0x16c   :  { %1134 = vmatprep.subr.bf16.mxu1 %v1359_v56 }
 0x16d   :  { %v1495_v34 = vpack.c.bf16 %v263_v31, %v258_v33  ;;  %v928_v35 = vpop.f32.mrb[16].mxu0 }
 0x16e   :  { %v273_v36 = vadd.f32 %v928_v35, %v1455_v58  ;;  %v267_v37 = vpop.f32.mrb[17].mxu0 }
 0x16f   :  { %v268_v38 = vadd.f32 %v1455_v58, %v267_v37 }
 0x171   :  { %v1499_v39 = vpack.c.bf16 %v273_v36, %v268_v38  ;;  %v931_v40 = vpop.f32.mrb[18].mxu0 }
 0x172   :  { %v283_v41 = vadd.f32 %v931_v40, %v1455_v58  ;;  %v277_v42 = vpop.f32.mrb[19].mxu0 }
 0x173   :  { %1136 = vmatpush3.bf16.xpose.msra.mxu1 %v1479_v19  ;;  %1148 = vmatpush3.bf16.xpose.msra.mxu0 %v1499_v39  ;;  %v278_v43 = vadd.f32 %v1455_v58, %v277_v42 }
 0x174   :  { %1137 = vmatprep.subr.bf16.mxu1 %v1359_v56  ;;  %1149 = vmatprep.subr.bf16.mxu0 %v1359_v56 }
 0x175   :  { %v1507_v44 = vpack.c.bf16 %v283_v41, %v278_v43  ;;  %v934_v45 = vpop.f32.mrb[20].mxu0 }
 0x176   :  { %v293_v46 = vadd.f32 %v934_v45, %v1455_v58  ;;  %v287_v47 = vpop.f32.mrb[21].mxu0 }
 0x177   :  { %v288_v48 = vadd.f32 %v1455_v58, %v287_v47 }
 0x179   :  { %v1511_v49 = vpack.c.bf16 %v293_v46, %v288_v48  ;;  %v937_v50 = vpop.f32.mrb[22].mxu0 }
 0x17a   :  { %v303_v51 = vadd.f32 %v937_v50, %v1455_v58  ;;  %v297_v52 = vpop.f32.mrb[23].mxu0 }
 0x17b   :  { %1139 = vmatpush3.bf16.xpose.msra.mxu1 %v1485_v24  ;;  %1151 = vmatpush3.bf16.xpose.msra.mxu0 %v1507_v44  ;;  %v298_v53 = vadd.f32 %v1455_v58, %v297_v52 }
 0x17c   :  { %1140 = vmatprep.subr.bf16.mxu1 %v1359_v56  ;;  %1152 = vmatprep.subr.bf16.mxu0 %v1359_v56 }
 0x17d   :  { %v1519_v54 = vpack.c.bf16 %v303_v51, %v298_v53  ;;  %v940_v55 = vpop.f32.mrb[24].mxu0 }
 0x17e   :  { %v313_v59 = vadd.f32 %v940_v55, %v1455_v58  ;;  %v307_v60 = vpop.f32.mrb[25].mxu0 }
 0x17f   :  { %v308_v61 = vadd.f32 %v1455_v58, %v307_v60 }
 0x181   :  { %v1523_v62 = vpack.c.bf16 %v313_v59, %v308_v61  ;;  %v943_v63 = vpop.f32.mrb[26].mxu0 }
 0x182   :  { %v323_v1 = vadd.f32 %v943_v63, %v1455_v58  ;;  %v317_v2 = vpop.f32.mrb[27].mxu0 }
 0x183   :  { %1142 = vmatpush3.bf16.xpose.msra.mxu1 %v1489_v29  ;;  %1154 = vmatpush3.bf16.xpose.msra.mxu0 %v1511_v49  ;;  %v318_v3 = vadd.f32 %v1455_v58, %v317_v2 }
 0x184   :  { %1143 = vmatprep.subr.bf16.mxu1 %v1359_v56  ;;  %1155 = vmatprep.subr.bf16.mxu0 %v1359_v56 }
 0x185   :  { %v1531_v5 = vpack.c.bf16 %v323_v1, %v318_v3  ;;  %v946_v6 = vpop.f32.mrb[28].mxu0 }
 0x186   :  { %v333_v7 = vadd.f32 %v946_v6, %v1455_v58  ;;  %v327_v8 = vpop.f32.mrb[29].mxu0 }
 0x187   :  { %v328_v10 = vadd.f32 %v1455_v58, %v327_v8 }
 0x189   :  { %v1535_v11 = vpack.c.bf16 %v333_v7, %v328_v10  ;;  %v949_v12 = vpop.f32.mrb[30].mxu0 }
 0x18a   :  { %v343_v13 = vadd.f32 %v949_v12, %v1455_v58  ;;  %v337_v15 = vpop.f32.mrb[31].mxu0 }
 0x18b   :  { %1145 = vmatpush3.bf16.xpose.msra.mxu1 %v1495_v34  ;;  %1157 = vmatpush3.bf16.xpose.msra.mxu0 %v1519_v54  ;;  %v338_v16 = vadd.f32 %v1455_v58, %v337_v15  ;;  %v411_v58 = vld [vmem:[#allocation3 + $0x8] sm:$0xff] }
 0x18c   :  { %1158 = vmatprep.subr.bf16.mxu0 %v1359_v56  ;;  %1170 = vmatprep.subr.bf16.mxu1 %v1359_v56 }
 0x18d   :  { %v1543_v17 = vpack.c.bf16 %v343_v13, %v338_v16 }
 0x192   :  { %983 = vmatmul.mubr.f32.vlgmr.msra.gmra.mrb[0].mxu1 %v410_v18 }
 0x193   :  { %1160 = vmatpush3.bf16.xpose.msra.mxu0 %v1523_v62  ;;  %1172 = vmatpush3.bf16.msra.mxu1 %v1459_v0  ;;  %v552_v0 = vlaneseq }
 0x194   :  { %1173 = vmatprep.subr.bf16.mxu1 %v1359_v56  ;;  %1161 = vmatprep.subr.bf16.mxu0 %v1359_v56 }
 0x195   :  { %1052 = vmatprep.mubr.msk.f32.mxu1 %vm1360_vm0, %v1361_v57 }
 0x197   :  { %1175 = vmatpush3.bf16.msra.mxu1 %v1465_v4  ;;  %v553_v4 = vand.u32 127, %v552_v0 }
 0x198   :  { %1176 = vmatprep.subr.bf16.mxu1 %v1359_v56 }
 0x199   :  { %vm554_vm1 = vcmp.lt.s32.totalorder %v553_v4, 8 }
 0x19b   :  { %1163 = vmatpush3.bf16.xpose.msra.mxu0 %v1531_v5  ;;  %1178 = vmatpush3.bf16.msra.mxu1 %v1469_v9 }
 0x19c   :  { %1179 = vmatprep.subr.bf16.mxu1 %v1359_v56  ;;  %1164 = vmatprep.subr.bf16.mxu0 %v1359_v56 }
 0x19f   :  { %1181 = vmatpush3.bf16.msra.mxu1 %v1475_v14 }
 0x1a0   :  { %1182 = vmatprep.subr.bf16.mxu1 %v1359_v56 }
 0x1a3   :  { %1166 = vmatpush3.bf16.xpose.msra.mxu0 %v1535_v11  ;;  %1184 = vmatpush3.bf16.msra.mxu1 %v1479_v19 }
 0x1a4   :  { %1185 = vmatprep.subr.bf16.mxu1 %v1359_v56  ;;  %1167 = vmatprep.subr.bf16.mxu0 %v1359_v56 }
 0x1a7   :  { %1187 = vmatpush3.bf16.msra.mxu1 %v1485_v24 }
 0x1a8   :  { %1188 = vmatprep.subr.bf16.mxu1 %v1359_v56 }
 0x1ab   :  { %1169 = vmatpush3.bf16.xpose.msra.mxu0 %v1543_v17  ;;  %1190 = vmatpush3.bf16.msra.mxu1 %v1489_v29 }
 0x1ac   :  { %1191 = vmatprep.subr.bf16.mxu1 %v1359_v56 }
 0x1af   :  { %1193 = vmatpush3.bf16.msra.mxu1 %v1495_v34 }
 0x1b0   :  { %1194 = vmatprep.subr.bf16.mxu1 %v1359_v56 }
 0x1b2   :  { %1018 = vmatmul.mubr.f32.vlgmr.msra.gmra.mrb[32].mxu0 %v411_v58 }
 0x265   :  { %v478_v9 = vpop.f32.mrb[0].mxu1 }
 0x266   :  { %v555_v14 = vsel %vm554_vm1, %v478_v9, -1e+30  ;;  %v984_v19 = vpop.f32.mrb[1].mxu1 }
 0x267   :  { %557 = vmax.xlane.f32.xlu0 %v555_v14 }
 0x285   :  { %v548_v20 = vpop.f32.mrb[32].mxu0 }
 0x286   :  { %v1019_v21 = vpop.f32.mrb[33].mxu0  ;;  %v556_v22 = vsel %vm554_vm1, %v548_v20, -1e+30 }
 0x287   :  { %559 = vmax.xlane.f32.xlu0 %v556_v22 }
 0x2f4   :  { %v558_v23 = vpop.xlane.xlu0 %557 }
 0x2f5   :  { %v561_v24 = vsub.f32 %v555_v14, %v558_v23 }
 0x2f7   :  { %v563_v25 = vmul.f32 1.442695, %v561_v24 }
 0x2f9   :  { %1228 = vpow2.f32 %v563_v25 }
 0x303   :  { %v1229_v26 = vpop.eup %1228 }
 0x304   :  { %567 = vadd.xlane.f32.xlu1 %v1229_v26 }
 0x314   :  { %v560_v27 = vpop.xlane.xlu0 %559 }
 0x315   :  { %v562_v28 = vsub.f32 %v556_v22, %v560_v27 }
 0x317   :  { %v565_v29 = vmul.f32 1.442695, %v562_v28 }
 0x319   :  { %1230 = vpow2.f32 %v565_v29 }
 0x323   :  { %v1231_v30 = vpop.eup %1230 }
 0x324   :  { %569 = vadd.xlane.f32.xlu1 %v1231_v30 }
 0x391   :  { %v568_v31 = vpop.xlane.xlu1 %567 }
 0x392   :  { %1232 = vrcp.f32 %v568_v31 }
 0x39c   :  { %v1233_v32 = vpop.eup %1232 }
 0x39d   :  { %v572_v33 = vmul.f32 %v1233_v32, %v1229_v26 }
 0x39f   :  { %1053 = vmatmul.mubr.f32.vlgmr.msra.gmra.mrb[2].mxu1 %v572_v33  ;;  %715 = vst [vmem:[#allocation10] sm:$0xff] %v572_v33 }
 0x3a0   :  { %1196 = vmatpush3.bf16.msra.mxu1 %v1499_v39  ;;  %1087 = vmatprep.mubr.msk.f32.mxu1 %vm1360_vm0, %v1361_v57 }
 0x3a1   :  { %1197 = vmatprep.subr.bf16.mxu1 %v1359_v56 }
 0x3a4   :  { %1199 = vmatpush3.bf16.msra.mxu1 %v1507_v44 }
 0x3a5   :  { %1200 = vmatprep.subr.bf16.mxu1 %v1359_v56 }
 0x3a8   :  { %1202 = vmatpush3.bf16.msra.mxu1 %v1511_v49 }
 0x3a9   :  { %1203 = vmatprep.subr.bf16.mxu1 %v1359_v56 }
 0x3ac   :  { %1205 = vmatpush3.bf16.msra.mxu1 %v1519_v54 }
 0x3ad   :  { %1206 = vmatprep.subr.bf16.mxu1 %v1359_v56 }
 0x3b0   :  { %1208 = vmatpush3.bf16.msra.mxu1 %v1523_v62 }
 0x3b1   :  { %v570_v34 = vpop.xlane.xlu1 %569  ;;  %1209 = vmatprep.subr.bf16.mxu1 %v1359_v56 }
 0x3b2   :  { %1234 = vrcp.f32 %v570_v34 }
 0x3b4   :  { %1211 = vmatpush3.bf16.msra.mxu1 %v1531_v5 }
 0x3b5   :  { %1212 = vmatprep.subr.bf16.mxu1 %v1359_v56 }
 0x3b8   :  { %1214 = vmatpush3.bf16.msra.mxu1 %v1535_v11 }
 0x3b9   :  { %1215 = vmatprep.subr.bf16.mxu1 %v1359_v56 }
 0x3bc   :  { %v1235_v57 = vpop.eup %1234  ;;  %1217 = vmatpush3.bf16.msra.mxu1 %v1543_v17 }
 0x3bd   :  { %v574_v35 = vmul.f32 %v1235_v57, %v1231_v30 }
 0x3bf   :  { %1088 = vmatmul.mubr.f32.vlgmr.msra.gmra.mrb[4].mxu1 %v574_v35  ;;  %716 = vst [vmem:[#allocation10 + $0x8] sm:$0xff] %v574_v35 }
 0x3c0   :  { %1313 = shalt.err (!%p1310_p0)
}
 0x3c1   :  { %s1314_s11 = scalar_lea.hbm %s1622_s5, 256 }
 0x3c2   :  { %p1315_p1 = scmp.ne.s32.totalorder %s1622_s5, %s1314_s11  ;;  %p1318_p2 = scmp.lt.u32.totalorder %s1314_s11, %s1622_s5 }
 0x3c4   :  { %p1320_p3 = pnand %p1318_p2, %p1315_p1 }
 0x3c6   :  { %1323 = shalt.err (!%p1320_p3)
}
 0x3c7   :  { %742 = dma.vmem_to_hbm [thread:$0]  %s737_s7, 256, %s1622_s5, [#allocation11], %s1356_s30, %s1356_s30, %s1357_s6  }
 0x3c8   :  { %s1363_s17 = smov [#allocation9]  }
 0x3c9   :  { %s724_s18 = sshll.u32 %s1363_s17, 4  ;;  %s725_s18 = int_to_ptr.vmem [resolvable:$true] %s724_s18 }
 0x3ca   :  { %s1324_s19 = scalar_lea.vmem %s725_s18, 256  ;;  %p1329_p5 = scmp.lt.s32.totalorder %s725_s18, %s725_s18 }
 0x3cb   :  { %p1325_p4 = scmp.ne.s32.totalorder %s725_s18, %s1324_s19  ;;  %p1330_p6 = scmp.lt.s32.totalorder %s1324_s19, %s1324_s19 }
 0x3cd   :  { %p1331_p7 = por %p1330_p6, %p1329_p5 }
 0x3cf   :  { %p1332_p8 = pnand %p1331_p7, %p1325_p4 }
 0x472   :  { %v641_v56 = vpop.f32.mrb[2].mxu1 }
 0x473   :  { %717 = vst [vmem:[#allocation9] sm:$0xff] %v641_v56  ;;  %v1054_v36 = vpop.f32.mrb[3].mxu1 }
 0x492   :  { %v711_v37 = vpop.f32.mrb[4].mxu1 }
 0x493   :  { %718 = vst [vmem:[#allocation9 + $0x8] sm:$0xff] %v711_v37  ;;  %v1089_v38 = vpop.f32.mrb[5].mxu1 }
 0x494   :  { %1335 = shalt.err (!%p1332_p8)
}
 0x495   :  { %s1336_s5 = scalar_lea.hbm %s1621_s4, 256 }
 0x496   :  { %p1337_p9 = scmp.ne.s32.totalorder %s1621_s4, %s1336_s5  ;;  %p1340_p10 = scmp.lt.u32.totalorder %s1336_s5, %s1621_s4 }
 0x498   :  { %p1342_p11 = pnand %p1340_p10, %p1337_p9 }
 0x49a   :  { %1345 = shalt.err (!%p1342_p11)
}
 0x49b   :  { %730 = dma.vmem_to_hbm [thread:$0]  %s725_s18, 256, %s1621_s4, [#allocation5], %s1356_s30, %s1356_s30, %s1357_s6  }
 0x49c   :  { %1350 = dma.done.wait [#allocation5], 256  }
 0x49d   :  { %1351 = vsyncadd [#allocation5], 4294967040 }
 0x49e   :  { %1352 = dma.done.wait [#allocation11], 256  }
 0x49f   :  { %1353 = vsyncadd [#allocation11], 4294967040 }
 0x4a0   :  { %749 = vsyncpa [#allocation4], 1 }
 0x4a1   :  { %750 = vsyncpa [#allocation7], 1 }
 0x4a2   :  { %751 = vsyncpa [#allocation5], 1 }
 0x4a3   :  { %752 = vsyncpa [#allocation11], 1 }

</bundles_post_ra>
